<compile_context>
chip_gen: v6e
topology: v6e:2x2x1
jax: 0.10.0
libtpu: 0.0.40
codegen_flags: <defaults>
</compile_context>

<pallas_src>
import functools

import jax
import jax.numpy as jnp
from jax.experimental import pallas as pl
from jax.experimental.pallas import tpu as pltpu


# ---------------------------------------------------------------------------
# Pallas kernel: one (batch, channel-block) step.
#
# x_ref    : (TC, H, W)        input tile (NCHW block, W on the lane axis)
# w_ref    : (TC, Kh, Kw)      per-sample, per-channel filters
# o_ref    : (TC, Ho, Wo)      output tile (stride already applied)
# scratch  : () if no padding, else (xpad_ref,) with xpad_ref: (TC, Hp, Wp)
# ---------------------------------------------------------------------------
def _dyd_kernel(x_ref, w_ref, o_ref, *scratch, Kh, Kw, ph, pw, sh, sw):
    TC, H, W = x_ref.shape
    Ho, Wo = o_ref.shape[-2], o_ref.shape[-1]

    if ph or pw:
        xpad_ref, = scratch
        Hp, Wp = xpad_ref.shape[-2], xpad_ref.shape[-1]
        # Zero only the halo rows/cols (cheap, O(perimeter)).  Done every step
        # (not pl.when(step==0)) because with megacore sharding each core has
        # its own scratch instance and may never see grid step (0, 0).
        if ph:
            xpad_ref[:, 0:ph, :] = jnp.zeros((TC, ph, Wp), xpad_ref.dtype)
            xpad_ref[:, ph + H:Hp, :] = jnp.zeros((TC, ph, Wp), xpad_ref.dtype)
        if pw:
            xpad_ref[:, :, 0:pw] = jnp.zeros((TC, Hp, pw), xpad_ref.dtype)
            xpad_ref[:, :, pw + W:Wp] = jnp.zeros((TC, Hp, pw), xpad_ref.dtype)
        xpad_ref[:, ph:ph + H, pw:pw + W] = x_ref[...]
        src = xpad_ref
    else:
        src = x_ref

    # Load the (TC, Kh, Kw) weights once; per-tap scalars are register slices.
    # TODO(synk): for very large C consider delivering weights as flattened
    # SMEM scalars to avoid the (Kh,Kw)->(8,128) VMEM tile padding entirely.
    wv = w_ref[...].astype(jnp.float32)

    # Register accumulation: no VMEM accumulator, single store at the end.
    acc = jnp.zeros((TC, Ho, Wo), jnp.float32)

    if sh == 1 and sw == 1:
        # Hot path: one VMEM read of the (padded) tile; taps are register
        # sublane/lane slices (XLU shifts), not per-tap VMEM loads.
        xv = src[...].astype(jnp.float32)
        for kh in range(Kh):
            rows = xv[:, kh:kh + Ho, :]              # sublane shift
            for kw in range(Kw):
                tap = rows[:, :, kw:kw + Wo]         # lane shift
                acc = acc + tap * wv[:, kh:kh + 1, kw:kw + 1]
    else:
        # Stride folded into the kernel: strided tap reads, (Ho, Wo) output
        # written directly (no dense-then-subsample pass).
        for kh in range(Kh):
            for kw in range(Kw):
                tap = src[:, pl.ds(kh, Ho, stride=sh), pl.ds(kw, Wo, stride=sw)]
                acc = acc + tap.astype(jnp.float32) * wv[:, kh:kh + 1, kw:kw + 1]

    o_ref[...] = acc.astype(o_ref.dtype)


# ---------------------------------------------------------------------------
# VMEM budgeting helpers
# ---------------------------------------------------------------------------
def _vmem_capacity_bytes():
    """Per-core VMEM capacity; conservative 64 MiB (v7x) fallback."""
    try:
        info = pltpu.get_tpu_info()
        cap = getattr(info, "vmem_capacity_bytes", None)
        if cap:
            return int(cap)
    except Exception:
        pass
    return 64 * 1024 * 1024


def _tiled_block_bytes(shape, dtype):
    """VMEM bytes of a block, accounting for (sublane,128) tile padding of the
    last two dims (a (TC,16,16) f32 block really occupies TC*16*128 words)."""
    itemsize = jnp.dtype(dtype).itemsize
    sub = max(8, 32 // itemsize)           # f32: 8, bf16: 16, int8/fp8: 32
    *lead, s, l = shape
    s_pad = -(-s // sub) * sub
    l_pad = -(-l // 128) * 128
    n = 1
    for d in lead:
        n *= d
    return n * s_pad * l_pad * itemsize


def _pick_channel_tile(B, C, footprint, budget_bytes, min_steps=4):
    """Largest channel tile (divisor of C) that fits the VMEM budget while
    leaving >= min_steps grid steps (feeds both v7x TensorCores)."""
    divisors = [d for d in range(1, C + 1) if C % d == 0]
    fitting = [d for d in divisors if footprint(d) <= budget_bytes] or [1]
    good = [d for d in fitting if B * (C // d) >= min_steps]
    return max(good) if good else max(fitting)


# ---------------------------------------------------------------------------
# Wrapper
# ---------------------------------------------------------------------------
def dyd_conv2d(x, weight, stride=(1, 1), padding=(0, 0)):
    """Dynamic depthwise conv2d. x: (B,C,H,W), weight: (B,C,Kh,Kw) -> (B,C,Ho,Wo)."""
    B, C, H, W = x.shape
    Bw, Cw, Kh, Kw = weight.shape
    assert Bw == B and Cw == C, "weight must be per-sample depthwise (B, C, Kh, Kw)"
    sh, sw = stride
    ph, pw = padding

    Ho = (H + 2 * ph - Kh) // sh + 1
    Wo = (W + 2 * pw - Kw) // sw + 1
    Hp, Wp = H + 2 * ph, W + 2 * pw
    has_pad = (ph > 0) or (pw > 0)

    # Generation-aware VMEM budgeting (v7x: 64 MiB/core; v5e/v6e: 128 MiB).
    vmem_cap = _vmem_capacity_bytes()
    if vmem_cap <= 64 * 1024 * 1024:
        budget, vmem_limit = 20 * 1024 * 1024, 48 * 1024 * 1024
    else:
        budget, vmem_limit = 52 * 1024 * 1024, 104 * 1024 * 1024

    def footprint(tc):
        x_blk = _tiled_block_bytes((tc, H, W), x.dtype)
        o_blk = _tiled_block_bytes((tc, Ho, Wo), x.dtype)
        w_blk = _tiled_block_bytes((tc, Kh, Kw), weight.dtype)
        pad_s = _tiled_block_bytes((tc, Hp, Wp), x.dtype) if has_pad else 0
        return 2 * (x_blk + o_blk + w_blk) + pad_s      # 2x: double-buffering

    TC = _pick_channel_tile(B, C, footprint, budget)
    # TODO(synk): for very large H*W (where even TC=1 overflows VMEM) add an
    # output-row-tile grid axis with manual halo DMA; only B and C are tiled.
    # TODO(synk): when W < 128 and C >= 128, a lane-dense NHWC-style layout
    # (channels on lanes) would avoid masked vst / lane-sparse vregs.

    kernel = functools.partial(_dyd_kernel, Kh=Kh, Kw=Kw, ph=ph, pw=pw, sh=sh, sw=sw)
    scratch = [pltpu.VMEM((TC, Hp, Wp), x.dtype)] if has_pad else []

    return pl.pallas_call(
        kernel,
        out_shape=jax.ShapeDtypeStruct((B, C, Ho, Wo), x.dtype),
        grid_spec=pltpu.PrefetchScalarGridSpec(
            num_scalar_prefetch=0,
            grid=(B, C // TC),
            in_specs=[
                pl.BlockSpec((None, TC, H, W), lambda b, cb: (b, cb, 0, 0)),
                pl.BlockSpec((None, TC, Kh, Kw), lambda b, cb: (b, cb, 0, 0)),
            ],
            out_specs=pl.BlockSpec((None, TC, Ho, Wo), lambda b, cb: (b, cb, 0, 0)),
            scratch_shapes=scratch,
        ),
        compiler_params=pltpu.CompilerParams(
            dimension_semantics=("parallel", "parallel"),
            vmem_limit_bytes=vmem_limit,
        ),
    )(x, weight)


# ---------------------------------------------------------------------------
# Thin module-style wrapper mirroring DYDConv2d_O
# ---------------------------------------------------------------------------
def _make_tuple(value, n):
    if not isinstance(value, (list, tuple)):
        return (value,) * n
    if len(value) > n:
        raise ValueError("too many items")
    return tuple(value) if len(value) == n else tuple(value) * n


class DYDConv2dO:
    def __init__(self, in_channels, out_channels, kernel_size, weight,
                 stride=1, padding=0, bias=False):
        if in_channels != out_channels:
            raise ValueError("DYDConv2d does not support in_channels != out_channels")
        if bias:
            raise ValueError("DYDConv2d does not support bias")
        self.stride = _make_tuple(stride, 2)
        self.padding = _make_tuple(padding, 2)
        self.weight = weight

    def __call__(self, x):
        return dyd_conv2d(x, self.weight, self.stride, self.padding)


# ---------------------------------------------------------------------------
# Pure-JAX reference (for correctness check only)
# ---------------------------------------------------------------------------
def _ref_dyd(x, w, stride, padding):
    B, C, H, W = x.shape
    _, _, Kh, Kw = w.shape
    sh, sw = stride
    ph, pw = padding
    Ho = (H + 2 * ph - Kh) // sh + 1
    Wo = (W + 2 * pw - Kw) // sw + 1
    xp = jnp.pad(x, ((0, 0), (0, 0), (ph, ph), (pw, pw)))
    out = jnp.zeros((B, C, Ho, Wo), x.dtype)
    for kh in range(Kh):
        for kw in range(Kw):
            patch = xp[:, :, kh:kh + Ho * sh:sh, kw:kw + Wo * sw:sw]
            out = out + patch * w[:, :, kh:kh + 1, kw:kw + 1]
    return out


if __name__ == "__main__":
    B, C, H, W = 2, 4, 16, 16
    K = 3

    key = jax.random.PRNGKey(0)
    kx, kw = jax.random.split(key)
    x = jax.random.normal(kx, (B, C, H, W), dtype=jnp.float32)
    weight = jax.random.normal(kw, (B, C, K, K), dtype=jnp.float32) * 0.1

    # "same" padded case -- the standard DYD configuration.
    mod = DYDConv2dO(C, C, K, weight, stride=1, padding=1, bias=False)
    out = jax.block_until_ready(mod(x))
    ref = _ref_dyd(x, weight, (1, 1), (1, 1))
    assert out.shape == ref.shape, (out.shape, ref.shape)
    assert jnp.allclose(out, ref, atol=1e-5, rtol=1e-5), float(jnp.max(jnp.abs(out - ref)))

    # Un-padded case (exercises the scratch-free path).
    mod0 = DYDConv2dO(C, C, K, weight, stride=1, padding=0, bias=False)
    out0 = jax.block_until_ready(mod0(x))
    ref0 = _ref_dyd(x, weight, (1, 1), (0, 0))
    assert out0.shape == ref0.shape, (out0.shape, ref0.shape)
    assert jnp.allclose(out0, ref0, atol=1e-5, rtol=1e-5), float(jnp.max(jnp.abs(out0 - ref0)))

    print("KERNEL_OK")
</pallas_src>

<mosaic_0001>
module attributes {stable_mosaic.version = 11 : i64} {
  func.func @_dyd_kernel(%arg0: i32, %arg1: i32, %arg2: memref<1x2x16x16xf32, #tpu.memory_space<vmem>>, %arg3: memref<1x2x3x3xf32, #tpu.memory_space<vmem>>, %arg4: memref<1x2x16x16xf32, #tpu.memory_space<vmem>>, %arg5: memref<2x18x18xf32, #tpu.memory_space<vmem>>) attributes {dimension_semantics = [#tpu.dimension_semantics<parallel>, #tpu.dimension_semantics<parallel>], iteration_bounds = array<i64: 2, 2>, scalar_prefetch = 0 : i64, scratch_operands = 1 : i64, tpu.core_type = #tpu.core_type<tc>, window_params = [{transform_indices = @transform_0, window_bounds = array<i64: 1, 2, 16, 16>}, {transform_indices = @transform_1, window_bounds = array<i64: 1, 2, 3, 3>}, {transform_indices = @transform_2, window_bounds = array<i64: 1, 2, 16, 16>}]} {
    %cst = arith.constant 0.000000e+00 : f32
    %0 = vector.broadcast %cst : f32 to vector<2x1x18xf32>
    %c0 = arith.constant 0 : index
    %c0_0 = arith.constant 0 : index
    %c0_1 = arith.constant 0 : index
    %1 = vector.load %arg5[%c0, %c0_0, %c0_1] : memref<2x18x18xf32, #tpu.memory_space<vmem>>, vector<2x1x18xf32>
    tpu.vector_store %arg5[%c0, %c0_0, %c0_1], %0 {strides = array<i32>} : memref<2x18x18xf32, #tpu.memory_space<vmem>>, vector<2x1x18xf32>,
    %cst_2 = arith.constant 0.000000e+00 : f32
    %2 = vector.broadcast %cst_2 : f32 to vector<2x1x18xf32>
    %c0_3 = arith.constant 0 : index
    %c17 = arith.constant 17 : index
    %c0_4 = arith.constant 0 : index
    %3 = vector.load %arg5[%c0_3, %c17, %c0_4] : memref<2x18x18xf32, #tpu.memory_space<vmem>>, vector<2x1x18xf32>
    tpu.vector_store %arg5[%c0_3, %c17, %c0_4], %2 {strides = array<i32>} : memref<2x18x18xf32, #tpu.memory_space<vmem>>, vector<2x1x18xf32>,
    %cst_5 = arith.constant 0.000000e+00 : f32
    %4 = vector.broadcast %cst_5 : f32 to vector<2x18x1xf32>
    %c0_6 = arith.constant 0 : index
    %c0_7 = arith.constant 0 : index
    %c0_8 = arith.constant 0 : index
    %5 = vector.load %arg5[%c0_6, %c0_7, %c0_8] : memref<2x18x18xf32, #tpu.memory_space<vmem>>, vector<2x18x1xf32>
    tpu.vector_store %arg5[%c0_6, %c0_7, %c0_8], %4 {strides = array<i32>} : memref<2x18x18xf32, #tpu.memory_space<vmem>>, vector<2x18x1xf32>,
    %cst_9 = arith.constant 0.000000e+00 : f32
    %6 = vector.broadcast %cst_9 : f32 to vector<2x18x1xf32>
    %c0_10 = arith.constant 0 : index
    %c0_11 = arith.constant 0 : index
    %c17_12 = arith.constant 17 : index
    %7 = vector.load %arg5[%c0_10, %c0_11, %c17_12] : memref<2x18x18xf32, #tpu.memory_space<vmem>>, vector<2x18x1xf32>
    tpu.vector_store %arg5[%c0_10, %c0_11, %c17_12], %6 {strides = array<i32>} : memref<2x18x18xf32, #tpu.memory_space<vmem>>, vector<2x18x1xf32>,
    %c0_13 = arith.constant 0 : index
    %c0_14 = arith.constant 0 : index
    %c0_15 = arith.constant 0 : index
    %c0_16 = arith.constant 0 : index
    %8 = vector.load %arg2[%c0_13, %c0_14, %c0_15, %c0_16] : memref<1x2x16x16xf32, #tpu.memory_space<vmem>>, vector<1x2x16x16xf32>
    %9 = vector.shape_cast %8 : vector<1x2x16x16xf32> to vector<2x16x16xf32>
    %c0_17 = arith.constant 0 : index
    %c1 = arith.constant 1 : index
    %c1_18 = arith.constant 1 : index
    %10 = vector.load %arg5[%c0_17, %c1, %c1_18] : memref<2x18x18xf32, #tpu.memory_space<vmem>>, vector<2x16x16xf32>
    tpu.vector_store %arg5[%c0_17, %c1, %c1_18], %9 {strides = array<i32>} : memref<2x18x18xf32, #tpu.memory_space<vmem>>, vector<2x16x16xf32>,
    %c0_19 = arith.constant 0 : index
    %c0_20 = arith.constant 0 : index
    %c0_21 = arith.constant 0 : index
    %c0_22 = arith.constant 0 : index
    %11 = vector.load %arg3[%c0_19, %c0_20, %c0_21, %c0_22] : memref<1x2x3x3xf32, #tpu.memory_space<vmem>>, vector<1x2x3x3xf32>
    %12 = vector.shape_cast %11 : vector<1x2x3x3xf32> to vector<2x3x3xf32>
    %cst_23 = arith.constant 0.000000e+00 : f32
    %13 = vector.broadcast %cst_23 : f32 to vector<2x16x16xf32>
    %c0_24 = arith.constant 0 : index
    %c0_25 = arith.constant 0 : index
    %c0_26 = arith.constant 0 : index
    %14 = vector.load %arg5[%c0_24, %c0_25, %c0_26] : memref<2x18x18xf32, #tpu.memory_space<vmem>>, vector<2x18x18xf32>
    %15 = vector.extract_strided_slice %14 {offsets = [0, 0, 0], sizes = [2, 16, 18], strides = [1, 1, 1]} : vector<2x18x18xf32> to vector<2x16x18xf32>
    %16 = vector.extract_strided_slice %15 {offsets = [0, 0, 0], sizes = [2, 16, 16], strides = [1, 1, 1]} : vector<2x16x18xf32> to vector<2x16x16xf32>
    %17 = vector.extract_strided_slice %12 {offsets = [0, 0, 0], sizes = [2, 1, 1], strides = [1, 1, 1]} : vector<2x3x3xf32> to vector<2x1x1xf32>
    %18 = vector.broadcast %17 : vector<2x1x1xf32> to vector<2x16x16xf32>
    %19 = arith.mulf %16, %18 : vector<2x16x16xf32>
    %20 = arith.addf %13, %19 : vector<2x16x16xf32>
    %21 = vector.extract_strided_slice %15 {offsets = [0, 0, 1], sizes = [2, 16, 16], strides = [1, 1, 1]} : vector<2x16x18xf32> to vector<2x16x16xf32>
    %22 = vector.extract_strided_slice %12 {offsets = [0, 0, 1], sizes = [2, 1, 1], strides = [1, 1, 1]} : vector<2x3x3xf32> to vector<2x1x1xf32>
    %23 = vector.broadcast %22 : vector<2x1x1xf32> to vector<2x16x16xf32>
    %24 = arith.mulf %21, %23 : vector<2x16x16xf32>
    %25 = arith.addf %20, %24 : vector<2x16x16xf32>
    %26 = vector.extract_strided_slice %15 {offsets = [0, 0, 2], sizes = [2, 16, 16], strides = [1, 1, 1]} : vector<2x16x18xf32> to vector<2x16x16xf32>
    %27 = vector.extract_strided_slice %12 {offsets = [0, 0, 2], sizes = [2, 1, 1], strides = [1, 1, 1]} : vector<2x3x3xf32> to vector<2x1x1xf32>
    %28 = vector.broadcast %27 : vector<2x1x1xf32> to vector<2x16x16xf32>
    %29 = arith.mulf %26, %28 : vector<2x16x16xf32>
    %30 = arith.addf %25, %29 : vector<2x16x16xf32>
    %31 = vector.extract_strided_slice %14 {offsets = [0, 1, 0], sizes = [2, 16, 18], strides = [1, 1, 1]} : vector<2x18x18xf32> to vector<2x16x18xf32>
    %32 = vector.extract_strided_slice %31 {offsets = [0, 0, 0], sizes = [2, 16, 16], strides = [1, 1, 1]} : vector<2x16x18xf32> to vector<2x16x16xf32>
    %33 = vector.extract_strided_slice %12 {offsets = [0, 1, 0], sizes = [2, 1, 1], strides = [1, 1, 1]} : vector<2x3x3xf32> to vector<2x1x1xf32>
    %34 = vector.broadcast %33 : vector<2x1x1xf32> to vector<2x16x16xf32>
    %35 = arith.mulf %32, %34 : vector<2x16x16xf32>
    %36 = arith.addf %30, %35 : vector<2x16x16xf32>
    %37 = vector.extract_strided_slice %31 {offsets = [0, 0, 1], sizes = [2, 16, 16], strides = [1, 1, 1]} : vector<2x16x18xf32> to vector<2x16x16xf32>
    %38 = vector.extract_strided_slice %12 {offsets = [0, 1, 1], sizes = [2, 1, 1], strides = [1, 1, 1]} : vector<2x3x3xf32> to vector<2x1x1xf32>
    %39 = vector.broadcast %38 : vector<2x1x1xf32> to vector<2x16x16xf32>
    %40 = arith.mulf %37, %39 : vector<2x16x16xf32>
    %41 = arith.addf %36, %40 : vector<2x16x16xf32>
    %42 = vector.extract_strided_slice %31 {offsets = [0, 0, 2], sizes = [2, 16, 16], strides = [1, 1, 1]} : vector<2x16x18xf32> to vector<2x16x16xf32>
    %43 = vector.extract_strided_slice %12 {offsets = [0, 1, 2], sizes = [2, 1, 1], strides = [1, 1, 1]} : vector<2x3x3xf32> to vector<2x1x1xf32>
    %44 = vector.broadcast %43 : vector<2x1x1xf32> to vector<2x16x16xf32>
    %45 = arith.mulf %42, %44 : vector<2x16x16xf32>
    %46 = arith.addf %41, %45 : vector<2x16x16xf32>
    %47 = vector.extract_strided_slice %14 {offsets = [0, 2, 0], sizes = [2, 16, 18], strides = [1, 1, 1]} : vector<2x18x18xf32> to vector<2x16x18xf32>
    %48 = vector.extract_strided_slice %47 {offsets = [0, 0, 0], sizes = [2, 16, 16], strides = [1, 1, 1]} : vector<2x16x18xf32> to vector<2x16x16xf32>
    %49 = vector.extract_strided_slice %12 {offsets = [0, 2, 0], sizes = [2, 1, 1], strides = [1, 1, 1]} : vector<2x3x3xf32> to vector<2x1x1xf32>
    %50 = vector.broadcast %49 : vector<2x1x1xf32> to vector<2x16x16xf32>
    %51 = arith.mulf %48, %50 : vector<2x16x16xf32>
    %52 = arith.addf %46, %51 : vector<2x16x16xf32>
    %53 = vector.extract_strided_slice %47 {offsets = [0, 0, 1], sizes = [2, 16, 16], strides = [1, 1, 1]} : vector<2x16x18xf32> to vector<2x16x16xf32>
    %54 = vector.extract_strided_slice %12 {offsets = [0, 2, 1], sizes = [2, 1, 1], strides = [1, 1, 1]} : vector<2x3x3xf32> to vector<2x1x1xf32>
    %55 = vector.broadcast %54 : vector<2x1x1xf32> to vector<2x16x16xf32>
    %56 = arith.mulf %53, %55 : vector<2x16x16xf32>
    %57 = arith.addf %52, %56 : vector<2x16x16xf32>
    %58 = vector.extract_strided_slice %47 {offsets = [0, 0, 2], sizes = [2, 16, 16], strides = [1, 1, 1]} : vector<2x16x18xf32> to vector<2x16x16xf32>
    %59 = vector.extract_strided_slice %12 {offsets = [0, 2, 2], sizes = [2, 1, 1], strides = [1, 1, 1]} : vector<2x3x3xf32> to vector<2x1x1xf32>
    %60 = vector.broadcast %59 : vector<2x1x1xf32> to vector<2x16x16xf32>
    %61 = arith.mulf %58, %60 : vector<2x16x16xf32>
    %62 = arith.addf %57, %61 : vector<2x16x16xf32>
    %c0_27 = arith.constant 0 : index
    %c0_28 = arith.constant 0 : index
    %c0_29 = arith.constant 0 : index
    %c0_30 = arith.constant 0 : index
    %63 = vector.load %arg4[%c0_27, %c0_28, %c0_29, %c0_30] : memref<1x2x16x16xf32, #tpu.memory_space<vmem>>, vector<1x2x16x16xf32>
    %64 = vector.shape_cast %63 : vector<1x2x16x16xf32> to vector<2x16x16xf32>
    %65 = vector.shape_cast %62 : vector<2x16x16xf32> to vector<1x2x16x16xf32>
    tpu.vector_store %arg4[%c0_27, %c0_28, %c0_29, %c0_30], %65 {strides = array<i32>} : memref<1x2x16x16xf32, #tpu.memory_space<vmem>>, vector<1x2x16x16xf32>,
    return
  }
  func.func @transform_0(%arg0: i32, %arg1: i32) -> (i32, i32, i32, i32) {
    %c0_i32 = arith.constant 0 : i32
    %c0_i32_0 = arith.constant 0 : i32
    %c0_i32_1 = arith.constant 0 : i32
    return %arg0, %arg1, %c0_i32, %c0_i32_0 : i32, i32, i32, i32
  }
  func.func @transform_1(%arg0: i32, %arg1: i32) -> (i32, i32, i32, i32) {
    %c0_i32 = arith.constant 0 : i32
    %c0_i32_0 = arith.constant 0 : i32
    %c0_i32_1 = arith.constant 0 : i32
    return %arg0, %arg1, %c0_i32, %c0_i32_0 : i32, i32, i32, i32
  }
  func.func @transform_2(%arg0: i32, %arg1: i32) -> (i32, i32, i32, i32) {
    %c0_i32 = arith.constant 0 : i32
    %c0_i32_0 = arith.constant 0 : i32
    %c0_i32_1 = arith.constant 0 : i32
    return %arg0, %arg1, %c0_i32, %c0_i32_0 : i32, i32, i32, i32
  }
}

</mosaic_0001>

<bundles_post_ra>
// kernel: tpu_custom_call.1
= control target key start
LH: loop header
LB: loop body
LE: loop exit
PB: predicated region body
PF: predicated region fallthrough
CT: control target
= control target key end

     0   :  { %7 = vsyncpa [#allocation4], 0  ;;  %s1429_s0 = inlined_call_operand.hbm [shape: f32[2,4,16,16], index: 0, kind: input, shape index: {}]   ;;  %s1430_s1 = inlined_call_operand.vmem [shape: f32[2,4,3,3], index: 1, kind: input, shape index: {}]   ;;  %s1431_s2 = inlined_call_operand.hbm [shape: f32[2,4,16,16], index: 2, kind: output, shape index: {}]  }
   0x1   :  { %9 = vsyncpa [#allocation4 + $0x1], 0 }
   0x2   :  { %10 = vsyncpa [#allocation5], 0 }
   0x3   :  { %12 = vsyncpa [#allocation5 + $0x1], 0  ;;  %s1054_s9 = smov 0   ;;  %s1056_s10 = smov 0  }
   0x4   :  { %s1058_s11 = smov 0   ;;  %s1060_s12 = smov 0  }
   0x5   :  { %s1062_s13 = smov 0   ;;  %s1064_s14 = smov 0  }
   0x6   :  { %s1066_s15 = smov 0   ;;  %s1068_s16 = smov 0  }
   0x7 LB: > { %s757_s17 = sadd.s32 4294967295, %s1027_s16   ;;  %s758_s18 = sadd.s32 4294967294, %s1027_s16   ;;  %s1027_s16 = sphi %s1068_s16, %s18_s16   ;;  %s1023_s15 = sphi %s1066_s15, %s1446_s15   ;;  %s1019_s14 = sphi %s1064_s14, %s1445_s14   ;;  %s1015_s13 = sphi %s1062_s13, %s1444_s13   ;;  %s1011_s12 = sphi %s1060_s12, %s1443_s12   ;;  %s1007_s11 = sphi %s1058_s11, %s1442_s11   ;;  %s1003_s10 = sphi %s1056_s10, %s1441_s10   ;;  %s999_s9 = sphi %s1054_s9, %s1440_s9  }
   0x8   : > { %s27_s19 = sadd.s32 1, %s1019_s14  ;;  %s30_s20 = sadd.s32 1, %s1023_s15 }
   0x9   : > { %p28_p0 = scmp.ge.s32.totalorder %s27_s19, 2  ;;  %s39_s21 = sadd.s32 1, %s1007_s11 }
   0xa   : > { %p46_p1 = scmp.ne.s32.totalorder %s1007_s11, %s1003_s10  ;;  %p47_p2 = scmp.eq.s32.totalorder %s1027_s16, 0 }
   0xb   : > { %s1448_s19 = smov (%p28_p0, %s27_s19), 0  ;;  %s1450_s20 = smov (!%p28_p0, %s30_s20), %s1023_s15 }
   0xc   : > { %s35_s22 = ssub.s32 %s1019_s14, %s1448_s19  ;;  %p1107_p3 = por %p47_p2, %p46_p1 }
   0xd   : > { %p32_p4 = scmp.ge.s32.totalorder %s1450_s20, 2  ;;  %p52_p5 = scmp.ne.s32.totalorder %s1003_s10, %s999_s9 }
   0xe   : > { %p53_p6 = scmp.eq.s32.totalorder %s757_s17, 0  ;;  %p106_p7 = scmp.eq.s32.totalorder %s757_s17, 3 }
   0xf   : > { %s1452_s20 = smov (%p32_p4, %s1450_s20), 0  ;;  %p112_p10 = scmp.eq.s32.totalorder %s758_s18, 3 }
  0x10   : > { %1434 = sst [smem:[#allocation9_spill]] %s1452_s20  ;;  %p1115_p8 = por %p53_p6, %p52_p5 }
  0x11   : > { %p1119_p9 = por %p106_p7, %p46_p1  ;;  %s34_s26 = ssub.s32 %s1023_s15, %s1452_s20 }
  0x12   : > { %s36_s27 = sor.u32 %s35_s22, %s34_s26  ;;  %p1125_p12 = por %p112_p10, %p52_p5 }
  0x13   : > { %p37_p11 = scmp.eq.s32.totalorder %s36_s27, 0  ;;  %p829_p13 = scmp.lt.s32.totalorder %s1027_s16, 4 }
  0x14   : > { %s132_s29 = sand.u32 1, %s1007_s11   ;;  %s779_s4 = sshll.u32 %s1019_s14, 2 }
  0x15   : > { %s1132_s30 = scalar_select %p37_p11, %s1007_s11, %s39_s21  }
  0x16   : > { %s761_s3 = sshll.u32 %s132_s29, 5  ;;  %s764_s5 = sshll.u32 %s1023_s15, 3 }
  0x17   : > { %s136_s6 = scalar_lea.vmem [#allocation3], %s761_s3  ;;  %s143_s8 = sadd.s32 %s779_s4, %s764_s5 }
  0x18   : > { %s146_s7 = sshll.u32 %s136_s6, 4  ;;  %s765_s17 = sshll.u32 %s143_s8, 7  ;;  %s147_s7 = int_to_ptr.vmem [resolvable:$true] %s146_s7 }
  0x19   : > { %p1138_p0 = pnand %p829_p13, %p1107_p3  ;;  %s145_s27 = scalar_lea.hbm %s1429_s0, %s765_s17 }
  0x1a   : > { %s133_s21 = scalar_lea.sflag [#allocation4], %s132_s29  ;;  %s916_s20 = scalar_lea.vmem %s147_s7, 512 }
  0x1b   : > { %p905_p1 = pneg %p1138_p0  ;;  %p917_p2 = scmp.ne.s32.totalorder %s147_s7, %s916_s20 }
  0x1c   : > { %s1029_s3 = smov [#allocation3]  }
  0x1d   : > { %p919_p4 = pnand %p917_p2, %p905_p1  ;;  %s921_s4 = sshll.u32 %s1029_s3, 4  ;;  %s922_s4 = int_to_ptr.vmem [resolvable:$false] %s921_s4 }
  0x1e   : > { %s923_s23 = scalar_lea.vmem %s922_s4, 1024  ;;  %p924_p3 = scmp.lt.s32.totalorder %s147_s7, %s922_s4 }
  0x1f   : > { %p920_p5 = pneg %p919_p4  ;;  %p925_p6 = scmp.lt.s32.totalorder %s923_s23, %s916_s20 }
  0x21   : > { %p926_p7 = por %p925_p6, %p924_p3 }
  0x23   : > { %p927_p10 = pnand %p926_p7, %p920_p5 }
  0x25   : > { %930 = shalt.err (!%p927_p10)
}
  0x26   : > { %s1030_s5 = smov 128   ;;  %s1031_s29 = smov 8  }
  0x27   : > { %824 = dma.hbm_to_vmem [thread:$0]  (!%p1138_p0), %s145_s27, 512, %s147_s7, %s133_s21, %s1030_s5, %s1030_s5, %s1031_s29  }
  0x28   : > { %p766_p11 = scmp.ge.s32.totalorder %s1027_s16, 1  ;;  %p167_p13 = scmp.lt.s32.totalorder %s1027_s16, 5 }
  0x2a   : > { %p168_p1 = pnand %p766_p11, %p167_p13 }
  0x2b   : > { %s1152_s6 = sand.u32 (!%p168_p1), 1, %s1003_s10  }
  0x2c   : > { %171 = sbr.rel (%p168_p1) target bundleno = 403 (0x193), region = 28  ;;  %s767_s20 = sshll.u32 (!%p168_p1), %s1152_s6, 5 }
  0x2d   : > { %s174_s8 = scalar_lea.sflag (!%p168_p1), [#allocation4], %s1152_s6  ;;  %s1158_s17 = scalar_lea.vmem (!%p168_p1), [#allocation3], %s767_s20 }
  0x31   : > { %990 = dma.done.wait (%p1115_p8), %s174_s8, 512  }
  0x32   : > { %992 = vsyncadd (%p1115_p8), %s174_s8, 4294966784  ;;  %s769_s7 = sshll.u32 %s1011_s12, 1  ;;  %p209_p0 = scmp.lt.s32.totalorder %s1015_s13, 1  ;;  %vm219_vm0 = vcmask 139264   ;;  %vm224_vm1 = vcmask 7168   ;;  %vm227_vm2 = vcmask 1024  }
  0x33   : > { %p211_p2 = scmp.lt.s32.totalorder %s769_s7, 3  ;;  %s1032_s23 = smov 126   ;;  %vm232_vm3 = vcmask 146568   ;;  %vm235_vm4 = vcmask 140424   ;;  %v1034_v4 = vmov 0.0   ;;  %v241_v7 = vld [vmem:[%s1158_s17 + $0x8] sm:$0xff] }
  0x34   : > { %s210_s18 = scalar_select %p209_p0, %s1015_s13, 1  ;;  %222 = vst.msk [vmem:[#allocation2 + $0x11] sm:$0x1] %vm219_vm0, %v1034_v4  ;;  %220 = vst.msk [vmem:[#allocation2] sm:$0x1] %vm219_vm0, %v1034_v4  ;;  %v240_v8 = vld [vmem:[%s1158_s17] sm:$0xff] }
  0x35   : > { %s1454_s7 = smov (!%p211_p2, %s769_s7), 3  ;;  %s1033_s24 = smov 127   ;;  %226 = vst.msk [vmem:[#allocation2 + $0x8] sm:$0xff] %vm224_vm1, %v1034_v4  ;;  %230 = vst.msk [vmem:[#allocation2 + $0x20] sm:$0xff] %vm224_vm1, %v1034_v4  ;;  %v243_v9 = vld [vmem:[%s1158_s17 + $0x18] sm:$0xff]  ;;  %v242_v10 = vld [vmem:[%s1158_s17 + $0x10] sm:$0xff] }
  0x36   : > { %s770_s22 = sshll.u32 %s210_s18, 2  ;;  %221 = vst.msk [vmem:[#allocation2 + $0x18] sm:$0x1] %vm219_vm0, %v1034_v4  ;;  %223 = vst.msk [vmem:[#allocation2 + $0x29] sm:$0x1] %vm219_vm0, %v1034_v4  ;;  %s1035_s5 = smov 1  }
  0x37   : > { %s214_s26 = sadd.s32 %s770_s22, %s1454_s7  ;;  %228 = vst.msk [vmem:[#allocation2 + $0x10] sm:$0x3] %vm227_vm2, %v1034_v4  ;;  %231 = vst.msk [vmem:[#allocation2 + $0x28] sm:$0x3] %vm227_vm2, %v1034_v4  ;;  %vm260_vm5 = vcmask 138248   ;;  %vm377_vm6 = vcmask 1046528  }
  0x38   : > { %s771_s27 = sshll.u32 %s214_s26, 2  ;;  %234 = vst.msk [vmem:[#allocation2 + $0x8] sm:$0xff] %vm232_vm3, %v1034_v4  ;;  %238 = vst.msk [vmem:[#allocation2 + $0x20] sm:$0xff] %vm232_vm3, %v1034_v4  ;;  %vm512_vm7 = vcmask 1045504   ;;  %vm627_vm8 = vcmask 130048  }
  0x39   : > { %s216_s4 = scalar_lea.vmem %s1430_s1, %s771_s27  ;;  %225 = vst.msk [vmem:[#allocation2] sm:$0xff] %vm224_vm1, %v1034_v4  ;;  %229 = vst.msk [vmem:[#allocation2 + $0x18] sm:$0xff] %vm224_vm1, %v1034_v4 }
  0x3a   : > { %v265_v0 = vld [vmem:[%s216_s4] sm:$0x7]  ;;  %v266_v1 = vld [vmem:[%s216_s4 + $0x4] sm:$0x7]  ;;  %236 = vst.msk [vmem:[#allocation2 + $0x10] sm:$0x3] %vm235_vm4, %v1034_v4 }
  0x3b   : > { %323 = vrot.lane.b32.xlu1 %v265_v0, %s1032_s23  ;;  %289 = vrot.lane.b32.xlu0 %v265_v0, %s1033_s24  ;;  %781 = vpush %v265_v0  ;;  %v358_v2 = vrot.slane %v266_v1, 1  ;;  %v357_v3 = vrot.slane %v265_v0, 1  ;;  %v493_v5 = vrot.slane %v266_v1, 2  ;;  %v492_v6 = vrot.slane %v265_v0, 2 }
  0x3c   : > { %783 = vpush %v266_v1 }
  0x3d   : > { %233 = vst.msk [vmem:[#allocation2] sm:$0xff] %vm232_vm3, %v1034_v4  ;;  %237 = vst.msk [vmem:[#allocation2 + $0x18] sm:$0xff] %vm232_vm3, %v1034_v4 }
  0x3e   : > { %239 = vst.msk [vmem:[#allocation2 + $0x28] sm:$0x3] %vm235_vm4, %v1034_v4 }
  0x3f   : > { %325 = vrot.lane.b32.xlu1 %v266_v1, %s1032_s23  ;;  %291 = vrot.lane.b32.xlu0 %v266_v1, %s1033_s24 }
  0x43   : > { %398 = vrot.lane.b32.xlu1 %v358_v2, %s1033_s24  ;;  %396 = vrot.lane.b32.xlu0 %v357_v3, %s1033_s24 }
  0x47   : > { %446 = vrot.lane.b32.xlu1 %v358_v2, %s1032_s23  ;;  %444 = vrot.lane.b32.xlu0 %v357_v3, %s1032_s23 }
  0x4b   : > { %533 = vrot.lane.b32.xlu1 %v493_v5, %s1033_s24  ;;  %531 = vrot.lane.b32.xlu0 %v492_v6, %s1033_s24 }
  0x4f   : > { %581 = vrot.lane.b32.xlu1 %v493_v5, %s1032_s23  ;;  %579 = vrot.lane.b32.xlu0 %v492_v6, %s1032_s23 }
  0x53   : > { %250 = vrot.lane.b32.xlu1 %v241_v7, %s1035_s5  ;;  %248 = vrot.lane.b32.xlu0 %v240_v8, %s1035_s5 }
  0x57   : > { %254 = vrot.lane.b32.xlu1 %v243_v9, %s1035_s5  ;;  %252 = vrot.lane.b32.xlu0 %v242_v10, %s1035_s5 }
  0x6c   : > { %s782_s29 = spop %781 }
  0x6d   : > { %v275_v27 = vstv %s782_s29  ;;  %s1202_s8 = spop %783 }
  0xad   : > { %v324_v11 = vpop.permute.xlu1 %323  ;;  %v290_v12 = vpop.permute.xlu0 %289 }
  0xae   : > { %785 = vpush %v290_v12 }
  0xb1   : > { %v326_v13 = vpop.permute.xlu1 %325  ;;  %v292_v14 = vpop.permute.xlu0 %291 }
  0xb2   : > { %787 = vpush %v292_v14 }
  0xb3   : > { %789 = vpush %v324_v11 }
  0xb4   : > { %791 = vpush %v326_v13 }
  0xb5   : > { %793 = vpush %v357_v3  ;;  %v399_v15 = vpop.permute.xlu1 %398  ;;  %v397_v16 = vpop.permute.xlu0 %396 }
  0xb6   : > { %795 = vpush %v358_v2 }
  0xb7   : > { %797 = vpush %v397_v16 }
  0xb8   : > { %799 = vpush %v399_v15 }
  0xb9   : > { %v447_v17 = vpop.permute.xlu1 %446  ;;  %v445_v18 = vpop.permute.xlu0 %444 }
  0xba   : > { %801 = vpush %v445_v18 }
  0xbb   : > { %803 = vpush %v447_v17 }
  0xbc   : > { %805 = vpush %v492_v6 }
  0xbd   : > { %807 = vpush %v493_v5  ;;  %v534_v19 = vpop.permute.xlu1 %533  ;;  %v532_v20 = vpop.permute.xlu0 %531 }
  0xbe   : > { %809 = vpush %v532_v20 }
  0xbf   : > { %811 = vpush %v534_v19 }
  0xc1   : > { %v582_v21 = vpop.permute.xlu1 %581  ;;  %v580_v22 = vpop.permute.xlu0 %579 }
  0xc2   : > { %813 = vpush %v580_v22 }
  0xc3   : > { %815 = vpush %v582_v21 }
  0xc5   : > { %v251_v23 = vpop.permute.xlu1 %250  ;;  %v249_v24 = vpop.permute.xlu0 %248 }
  0xc6   : > { %262 = vst.msk [vmem:[#allocation2 + $0x9] sm:$0xff] %vm260_vm5, %v251_v23  ;;  %261 = vst.msk [vmem:[#allocation2 + $0x1] sm:$0xff] %vm260_vm5, %v249_v24 }
  0xc9   : > { %v255_v25 = vpop.permute.xlu1 %254  ;;  %v253_v26 = vpop.permute.xlu0 %252 }
  0xca   : > { %264 = vst.msk [vmem:[#allocation2 + $0x21] sm:$0xff] %vm260_vm5, %v255_v25  ;;  %263 = vst.msk [vmem:[#allocation2 + $0x19] sm:$0xff] %vm260_vm5, %v253_v26 }
  0xcd   : > { %v1192_v28 = vld [vmem:[#allocation2] sm:$0xff]  ;;  %v1194_v29 = vld [vmem:[#allocation2 + $0x8] sm:$0xff]  ;;  %v1217_v43 = vld [vmem:[#allocation2 + $0x10] sm:$0x3] }
  0xce   : > { %v1197_v30 = vmul.f32 %v275_v27, %v1192_v28  ;;  %v1200_v31 = vmul.f32 %v275_v27, %v1194_v29 }
  0xd1   : > { %v1208_v35 = vld [vmem:[#allocation2 + $0x18] sm:$0xff]  ;;  %v1210_v36 = vld [vmem:[#allocation2 + $0x20] sm:$0xff]  ;;  %v1214_v41 = vld [vmem:[#allocation2 + $0x28] sm:$0x3] }
  0xdf   : > { %s786_s17 = spop %785 }
  0xe0   : > { %v294_v32 = vstv %s786_s17 }
  0xe1   : > { %v299_v33 = vmul.f32 %v294_v32, %v1192_v28  ;;  %v300_v34 = vmul.f32 %v294_v32, %v1194_v29 }
  0xe3   : > { %s788_s7 = spop %787  ;;  %309 = vrot.lane.b32.xlu1 %v300_v34, %s1033_s24  ;;  %307 = vrot.lane.b32.xlu0 %v299_v33, %s1033_s24 }
  0xe4   : > { %v297_v37 = vstv %s788_s7  ;;  %s790_s18 = spop %789 }
  0xe5   : > { %v301_v38 = vmul.f32 %v297_v37, %v1208_v35  ;;  %v302_v39 = vmul.f32 %v297_v37, %v1210_v36  ;;  %v328_v40 = vstv %s790_s18  ;;  %s792_s22 = spop %791 }
  0xe6   : > { %s794_s26 = spop %793  ;;  %v333_v42 = vmul.f32 %v328_v40, %v1192_v28  ;;  %v334_v49 = vmul.f32 %v328_v40, %v1194_v29  ;;  %v331_v53 = vstv %s792_s22 }
  0xe7   : > { %v360_v44 = vstv %s794_s26  ;;  %s796_s27 = spop %795  ;;  %313 = vrot.lane.b32.xlu1 %v302_v39, %s1033_s24  ;;  %311 = vrot.lane.b32.xlu0 %v301_v38, %s1033_s24  ;;  %v335_v54 = vmul.f32 %v331_v53, %v1208_v35  ;;  %v336_v55 = vmul.f32 %v331_v53, %v1210_v36 }
  0xe8   : > { %v1222_v45 = vmul.f32 %v360_v44, %v1192_v28  ;;  %v1225_v46 = vmul.f32 %v360_v44, %v1194_v29  ;;  %v1228_v47 = vmul.f32 %v360_v44, %v1217_v43  ;;  %v363_v48 = vstv %s796_s27  ;;  %s798_s21 = spop %797  ;;  %s206_s27 = scalar_lea.vmem [#allocation6], %s767_s20 }
  0xe9   : > { %v1232_v50 = vmul.f32 %v363_v48, %v1208_v35  ;;  %v1235_v51 = vmul.f32 %v363_v48, %v1210_v36  ;;  %v1238_v52 = vmul.f32 %v363_v48, %v1214_v41  ;;  %s800_s3 = spop %799  ;;  %v401_v56 = vstv %s798_s21  ;;  %s649_s21 = sshll.u32 %s206_s27, 4  ;;  %s1368_s21 = int_to_ptr.vmem [resolvable:$true] %s649_s21 }
  0xea   : > { %v407_v57 = vmul.f32 %v401_v56, %v1194_v29  ;;  %v408_v60 = vmul.f32 %v401_v56, %v1217_v43  ;;  %v406_v0 = vmul.f32 %v401_v56, %v1192_v28  ;;  %v404_v1 = vstv %s800_s3 }
  0xeb   : > { %s802_s4 = spop %801  ;;  %343 = vrot.lane.b32.xlu1 %v334_v49, %s1032_s23  ;;  %341 = vrot.lane.b32.xlu0 %v333_v42, %s1032_s23  ;;  %v410_v8 = vmul.f32 %v404_v1, %v1210_v36  ;;  %v411_v9 = vmul.f32 %v404_v1, %v1214_v41  ;;  %v409_v11 = vmul.f32 %v404_v1, %v1208_v35  ;;  %v378_v16 = vrot.slane %v1222_v45, 1 }
  0xec   : > { %s1242_s5 = spop %803  ;;  %v449_v5 = vstv %s802_s4  ;;  %v419_v6 = vrot.slane %v407_v57, 1  ;;  %v421_v7 = vrot.slane %v408_v60, 1  ;;  %v418_v10 = vrot.slane %v406_v0, 1  ;;  %s633_s4 = scalar_lea.sflag [#allocation5], %s1152_s6 }
  0xed   : > { %s806_s29 = spop %805  ;;  %v454_v12 = vmul.f32 %v449_v5, %v1192_v28  ;;  %v455_v13 = vmul.f32 %v449_v5, %v1194_v29  ;;  %v456_v14 = vmul.f32 %v449_v5, %v1217_v43  ;;  %v452_v15 = vstv %s1242_s5  ;;  %s931_s5 = scalar_lea.vmem %s1368_s21, 512 }
  0xee   : > { %s808_s17 = spop %807  ;;  %v495_v58 = vstv %s806_s29  ;;  %v379_v17 = vrot.slane %v1225_v46, 1  ;;  %v381_v18 = vrot.slane %v1228_v47, 1  ;;  %v383_v19 = vrot.slane %v1232_v50, 1  ;;  %p932_p8 = scmp.ne.s32.totalorder %s1368_s21, %s931_s5 }
  0xef   : > { %347 = vrot.lane.b32.xlu1 %v336_v55, %s1032_s23  ;;  %345 = vrot.lane.b32.xlu0 %v335_v54, %s1032_s23  ;;  %v498_v59 = vstv %s808_s17  ;;  %v1251_v61 = vmul.f32 %v495_v58, %v1192_v28  ;;  %v1254_v62 = vmul.f32 %v495_v58, %v1194_v29  ;;  %v502_v63 = vmul.f32 %v495_v58, %v1217_v43  ;;  %s810_s7 = spop %809  ;;  %s1036_s29 = smov [#allocation6]  }
  0xf0   : > { %v1259_v2 = vmul.f32 %v498_v59, %v1208_v35  ;;  %v504_v3 = vmul.f32 %v498_v59, %v1210_v36  ;;  %v505_v4 = vmul.f32 %v498_v59, %v1214_v41  ;;  %v384_v20 = vrot.slane %v1235_v51, 1  ;;  %s812_s18 = spop %811  ;;  %p933_p4 = pnand %p932_p8, %p1119_p9 }
  0xf1   : > { %v424_v21 = vrot.slane %v410_v8, 1  ;;  %v426_v22 = vrot.slane %v411_v9, 1  ;;  %v422_v23 = vsel %vm377_vm6, %v419_v6, %v421_v7  ;;  %v386_v24 = vrot.slane %v1238_v52, 1  ;;  %s935_s17 = sshll.u32 %s1036_s29, 4  ;;  %s936_s17 = int_to_ptr.vmem [resolvable:$false] %s935_s17 }
  0xf2   : > { %v423_v25 = vrot.slane %v409_v11, 1  ;;  %v458_v26 = vmul.f32 %v452_v15, %v1210_v36  ;;  %v459_v27 = vmul.f32 %v452_v15, %v1214_v41  ;;  %v466_v32 = vrot.slane %v454_v12, 1  ;;  %p934_p5 = pneg %p933_p4  ;;  %p938_p3 = scmp.lt.s32.totalorder %s1368_s21, %s936_s17 }
  0xf3   : > { %430 = vrot.lane.b32.xlu1 %v422_v23, %s1033_s24  ;;  %v467_v33 = vrot.slane %v455_v13, 1  ;;  %v469_v34 = vrot.slane %v456_v14, 1  ;;  %v420_v37 = vsel %vm377_vm6, %v418_v10, %v419_v6  ;;  %v513_v38 = vrot.slane %v1251_v61, 2  ;;  %s814_s22 = spop %813 }
  0xf4   : > { %v514_v39 = vrot.slane %v1254_v62, 2  ;;  %v516_v40 = vrot.slane %v502_v63, 2  ;;  %v536_v42 = vstv %s810_s7  ;;  %428 = vrot.lane.b32.xlu0 %v420_v37, %s1033_s24  ;;  %v518_v44 = vrot.slane %v1259_v2, 2  ;;  %s816_s26 = spop %815  ;;  %s937_s7 = scalar_lea.vmem %s936_s17, 1024 }
  0xf5   : > { %v519_v45 = vrot.slane %v504_v3, 2  ;;  %v521_v46 = vrot.slane %v505_v4, 2  ;;  %v427_v47 = vsel %vm377_vm6, %v424_v21, %v426_v22  ;;  %v457_v48 = vmul.f32 %v452_v15, %v1208_v35  ;;  %p939_p6 = scmp.lt.s32.totalorder %s937_s7, %s931_s5 }
  0xf6   : > { %v472_v49 = vrot.slane %v458_v26, 1  ;;  %v474_v50 = vrot.slane %v459_v27, 1  ;;  %v539_v51 = vstv %s812_s18  ;;  %v542_v52 = vmul.f32 %v536_v42, %v1194_v29 }
  0xf7   : > { %434 = vrot.lane.b32.xlu1 %v427_v47, %s1033_s24  ;;  %v543_v53 = vmul.f32 %v536_v42, %v1217_v43  ;;  %v425_v54 = vsel %vm377_vm6, %v423_v25, %v424_v21  ;;  %v1292_v55 = vsel %vm377_vm6, %v379_v17, %v381_v18  ;;  %v1296_v56 = vsel %vm377_vm6, %v378_v16, %v379_v17  ;;  %p940_p7 = por %p939_p6, %p938_p3 }
  0xf8   : > { %432 = vrot.lane.b32.xlu0 %v425_v54, %s1033_s24  ;;  %v1299_v57 = vsel %vm377_vm6, %v384_v20, %v386_v24  ;;  %v1302_v58 = vsel %vm377_vm6, %v383_v19, %v384_v20  ;;  %v1305_v59 = vsel %vm512_vm7, %v514_v39, %v516_v40  ;;  %v470_v60 = vsel %vm377_vm6, %v467_v33, %v469_v34 }
  0xf9   : > { %v1309_v61 = vsel %vm512_vm7, %v513_v38, %v514_v39  ;;  %v1312_v62 = vsel %vm512_vm7, %v519_v45, %v521_v46  ;;  %v1315_v63 = vsel %vm512_vm7, %v518_v44, %v519_v45  ;;  %v471_v0 = vrot.slane %v457_v48, 1  ;;  %p941_p10 = pnand %p940_p7, %p934_p5 }
  0xfa   : > { %v541_v1 = vmul.f32 %v536_v42, %v1192_v28  ;;  %v468_v2 = vsel %vm377_vm6, %v466_v32, %v467_v33  ;;  %v545_v3 = vmul.f32 %v539_v51, %v1210_v36  ;;  %v546_v4 = vmul.f32 %v539_v51, %v1214_v41 }
  0xfb   : > { %478 = vrot.lane.b32.xlu1 %v470_v60, %s1032_s23  ;;  %v554_v5 = vrot.slane %v542_v52, 2  ;;  %v556_v6 = vrot.slane %v543_v53, 2  ;;  %v584_v7 = vstv %s814_s22  ;;  %v475_v8 = vsel %vm377_vm6, %v472_v49, %v474_v50 }
  0xfc   : > { %476 = vrot.lane.b32.xlu0 %v468_v2, %s1032_s23  ;;  %v553_v9 = vrot.slane %v541_v1, 2  ;;  %v544_v10 = vmul.f32 %v539_v51, %v1208_v35  ;;  %v473_v11 = vsel %vm377_vm6, %v471_v0, %v472_v49  ;;  %v590_v12 = vmul.f32 %v584_v7, %v1194_v29 }
  0xfd   : > { %v559_v13 = vrot.slane %v545_v3, 2  ;;  %v561_v14 = vrot.slane %v546_v4, 2  ;;  %v591_v15 = vmul.f32 %v584_v7, %v1217_v43  ;;  %v557_v16 = vsel %vm512_vm7, %v554_v5, %v556_v6 }
  0xfe   : > { %v587_v17 = vstv %s816_s26  ;;  %v558_v18 = vrot.slane %v544_v10, 2  ;;  %v589_v19 = vmul.f32 %v584_v7, %v1192_v28  ;;  %v555_v20 = vsel %vm512_vm7, %v553_v9, %v554_v5 }
  0xff   : > { %482 = vrot.lane.b32.xlu1 %v475_v8, %s1032_s23  ;;  %v602_v21 = vrot.slane %v590_v12, 2  ;;  %v604_v29 = vrot.slane %v591_v15, 2  ;;  %v593_v22 = vmul.f32 %v587_v17, %v1210_v36  ;;  %v594_v23 = vmul.f32 %v587_v17, %v1214_v41 }
 0x100   : > { %480 = vrot.lane.b32.xlu0 %v473_v11, %s1032_s23  ;;  %v562_v43 = vsel %vm512_vm7, %v559_v13, %v561_v14  ;;  %v601_v24 = vrot.slane %v589_v19, 2  ;;  %v592_v25 = vmul.f32 %v587_v17, %v1208_v35  ;;  %v560_v26 = vsel %vm512_vm7, %v558_v18, %v559_v13 }
 0x101   : > { %v607_v28 = vrot.slane %v593_v22, 2  ;;  %v609_v27 = vrot.slane %v594_v23, 2  ;;  %v605_v32 = vsel %vm512_vm7, %v602_v21, %v604_v29  ;;  %v279_v44 = vstv %s1202_s8 }
 0x102   : > { %v606_v33 = vrot.slane %v592_v25, 2  ;;  %v603_v41 = vsel %vm512_vm7, %v601_v24, %v602_v21  ;;  %v283_v49 = vmul.f32 %v279_v44, %v1208_v35  ;;  %v284_v50 = vmul.f32 %v279_v44, %v1210_v36 }
 0x103   : > { %565 = vrot.lane.b32.xlu1 %v557_v16, %s1033_s24  ;;  %v610_v34 = vsel %vm512_vm7, %v607_v28, %v609_v27 }
 0x104   : > { %563 = vrot.lane.b32.xlu0 %v555_v20, %s1033_s24  ;;  %v608_v37 = vsel %vm512_vm7, %v606_v33, %v607_v28 }
 0x107   : > { %569 = vrot.lane.b32.xlu1 %v562_v43, %s1033_s24 }
 0x108   : > { %567 = vrot.lane.b32.xlu0 %v560_v26, %s1033_s24  ;;  %s775_s24 = sshll.u32 %s1015_s13, 3 }
 0x10b   : > { %613 = vrot.lane.b32.xlu1 %v605_v32, %s1032_s23 }
 0x10c   : > { %611 = vrot.lane.b32.xlu0 %v603_v41, %s1032_s23 }
 0x10f   : > { %617 = vrot.lane.b32.xlu1 %v610_v34, %s1032_s23 }
 0x110   : > { %615 = vrot.lane.b32.xlu0 %v608_v37, %s1032_s23  ;;  %s780_s23 = sshll.u32 %s1011_s12, 2 }
 0x111   : > { %s646_s8 = sadd.s32 %s780_s23, %s775_s24 }
 0x112   : > { %s776_s3 = sshll.u32 %s646_s8, 7 }
 0x113   : > { %s1375_s20 = scalar_lea.hbm %s1431_s2, %s776_s3 }
 0x155   : > { %v310_v38 = vpop.permute.xlu1 %309  ;;  %v308_v39 = vpop.permute.xlu0 %307 }
 0x156   : > { %v320_v45 = vadd.f32 %v310_v38, %v1200_v31  ;;  %v319_v46 = vadd.f32 %v308_v39, %v1197_v30 }
 0x159   : > { %v314_v40 = vpop.permute.xlu1 %313  ;;  %v312_v42 = vpop.permute.xlu0 %311 }
 0x15a   : > { %v322_v53 = vadd.f32 %v314_v40, %v284_v50  ;;  %v321_v54 = vadd.f32 %v312_v42, %v283_v49 }
 0x15d   : > { %v344_v47 = vpop.permute.xlu1 %343  ;;  %v342_v48 = vpop.permute.xlu0 %341 }
 0x15e   : > { %v354_v51 = vadd.f32 %v344_v47, %v320_v45  ;;  %v353_v52 = vadd.f32 %v342_v48, %v319_v46 }
 0x160   : > { %v393_v60 = vadd.f32 %v1292_v55, %v354_v51  ;;  %v392_v0 = vadd.f32 %v1296_v56, %v353_v52 }
 0x161   : > { %v348_v1 = vpop.permute.xlu1 %347  ;;  %v346_v2 = vpop.permute.xlu0 %345 }
 0x162   : > { %v356_v3 = vadd.f32 %v348_v1, %v322_v53  ;;  %v355_v31 = vadd.f32 %v346_v2, %v321_v54 }
 0x164   : > { %v395_v30 = vadd.f32 %v1299_v57, %v356_v3  ;;  %v394_v4 = vadd.f32 %v1302_v58, %v355_v31 }
 0x165   : > { %v431_v5 = vpop.permute.xlu1 %430 }
 0x166   : > { %v429_v35 = vpop.permute.xlu0 %428  ;;  %v441_v7 = vadd.f32 %v431_v5, %v393_v60 }
 0x167   : > { %v440_v9 = vadd.f32 %v429_v35, %v392_v0 }
 0x169   : > { %v435_v6 = vpop.permute.xlu1 %434 }
 0x16a   : > { %v433_v36 = vpop.permute.xlu0 %432  ;;  %v443_v55 = vadd.f32 %v435_v6, %v395_v30 }
 0x16b   : > { %v442_v14 = vadd.f32 %v433_v36, %v394_v4 }
 0x16d   : > { %v479_v8 = vpop.permute.xlu1 %478 }
 0x16e   : > { %v489_v10 = vadd.f32 %v479_v8, %v441_v7  ;;  %v477_v11 = vpop.permute.xlu0 %476 }
 0x16f   : > { %v488_v56 = vadd.f32 %v477_v11, %v440_v9 }
 0x170   : > { %v528_v12 = vadd.f32 %v1305_v59, %v489_v10 }
 0x171   : > { %v483_v13 = vpop.permute.xlu1 %482  ;;  %v527_v58 = vadd.f32 %v1309_v61, %v488_v56 }
 0x172   : > { %v491_v57 = vadd.f32 %v483_v13, %v443_v55  ;;  %v481_v15 = vpop.permute.xlu0 %480 }
 0x173   : > { %v490_v16 = vadd.f32 %v481_v15, %v442_v14 }
 0x174   : > { %v530_v17 = vadd.f32 %v1312_v62, %v491_v57 }
 0x175   : > { %v566_v18 = vpop.permute.xlu1 %565  ;;  %v529_v19 = vadd.f32 %v1315_v63, %v490_v16 }
 0x176   : > { %v564_v20 = vpop.permute.xlu0 %563  ;;  %v576_v22 = vadd.f32 %v566_v18, %v528_v12 }
 0x177   : > { %v575_v23 = vadd.f32 %v564_v20, %v527_v58 }
 0x179   : > { %v570_v21 = vpop.permute.xlu1 %569 }
 0x17a   : > { %v568_v29 = vpop.permute.xlu0 %567  ;;  %v578_v62 = vadd.f32 %v570_v21, %v530_v17 }
 0x17b   : > { %v577_v25 = vadd.f32 %v568_v29, %v529_v19 }
 0x17d   : > { %v614_v59 = vpop.permute.xlu1 %613 }
 0x17e   : > { %v624_v43 = vadd.f32 %v614_v59, %v576_v22  ;;  %v612_v61 = vpop.permute.xlu0 %611 }
 0x17f   : > { %v623_v63 = vadd.f32 %v612_v61, %v575_v23 }
 0x180   : > { %629 = vst.msk [vmem:[%s206_s27 + $0x8] sm:$0xff] %vm627_vm8, %v624_v43 }
 0x181   : > { %v618_v24 = vpop.permute.xlu1 %617  ;;  %628 = vst.msk [vmem:[%s206_s27] sm:$0xff] %vm627_vm8, %v623_v63 }
 0x182   : > { %v626_v26 = vadd.f32 %v618_v24, %v578_v62  ;;  %v616_v28 = vpop.permute.xlu0 %615 }
 0x183   : > { %v625_v27 = vadd.f32 %v616_v28, %v577_v25 }
 0x184   : > { %631 = vst.msk [vmem:[%s206_s27 + $0x18] sm:$0xff] %vm627_vm8, %v626_v26 }
 0x185   : > { %630 = vst.msk [vmem:[%s206_s27 + $0x10] sm:$0xff] %vm627_vm8, %v625_v27 }
 0x186   : > { %944 = shalt.err (!%p941_p10)
}
 0x187   : > { %s945_s18 = scalar_lea.hbm %s1375_s20, 512  ;;  %s949_s23 = scalar_lea.hbm %s1431_s2, 2048 }
 0x188   : > { %p946_p11 = scmp.ne.s32.totalorder %s1375_s20, %s945_s18  ;;  %p950_p0 = scmp.lt.s32.totalorder %s1375_s20, %s1431_s2 }
 0x189   : > { %p951_p2 = scmp.lt.s32.totalorder %s949_s23, %s945_s18 }
 0x18a   : > { %p947_p13 = pnand %p946_p11, %p1119_p9 }
 0x18b   : > { %p952_p8 = por %p951_p2, %p950_p0 }
 0x18c   : > { %p948_p1 = pneg %p947_p13 }
 0x18e   : > { %p953_p4 = pnand %p952_p8, %p948_p1 }
 0x190   : > { %956 = shalt.err (!%p953_p4)
}
 0x191   : > { %s1037_s27 = smov 128   ;;  %s1038_s3 = smov 8  }
 0x192   : > { %819 = dma.vmem_to_hbm [thread:$0]  (%p1119_p9), %s1368_s21, 512, %s1375_s20, %s633_s4, %s1037_s27, %s1037_s27, %s1038_s3  }
 0x193 PF: > { %p830_p5 = scmp.ge.s32.totalorder %s1027_s16, 2  ;;  %s664_s12 = sand.u32 1, %s999_s9  }
 0x194   : > { %s665_s13 = scalar_lea.sflag [#allocation5], %s664_s12 }
 0x195   : > { %p826_p3 = pnand %p830_p5, %p1125_p12 }
 0x197   : > { %p827_p6 = pneg %p826_p3 }
 0x199   : > { %994 = dma.done.wait (%p827_p6), %s665_s13, 512  }
 0x19a   : > { %996 = vsyncadd (%p827_p6), %s665_s13, 4294966784  ;;  %s18_s16 = sadd.s32 1, %s1027_s16   ;;  %s1439_s25 = sld [smem:[#allocation9_spill]] }
 0x19b   : > { %p15_p7 = scmp.ge.s32.totalorder %s18_s16, 6   ;;  %s1440_s9 = smov %s1003_s10 }
 0x19c   : > { %s1441_s10 = smov %s1007_s11  ;;  %s1442_s11 = smov %s1132_s30 }
 0x19d   : > { %s1443_s12 = smov %s1019_s14  ;;  %s1444_s13 = smov %s1023_s15 }
 0x19e   : > { %s1445_s14 = smov %s1448_s19  ;;  %17 = sbr.rel (!%p15_p7) target bundleno = 7 (0x7), region = 76 }
 0x1a0   : > { %s1446_s15 = smov %s1439_s25 }
 0x1a3   :  { %670 = vsyncpa [#allocation4], 1 }
 0x1a4   :  { %672 = vsyncpa [#allocation4 + $0x1], 1 }
 0x1a5   :  { %673 = vsyncpa [#allocation5], 1 }
 0x1a6   :  { %675 = vsyncpa [#allocation5 + $0x1], 1 }

</bundles_post_ra>
